<compile_context>
chip_gen: v5e
topology: v5e:2x2
jax: 0.10.0
libtpu: 0.0.40
codegen_flags: <defaults>
</compile_context>

<pallas_src>
import jax
import jax.numpy as jnp
from jax.experimental import pallas as pl
from jax.experimental.pallas import tpu as pltpu


def _round_up(x, m):
    return (x + m - 1) // m * m


def _make_kernel(n_valid, hidden_pad):
    def kernel(x_ref, wuv_ref, buv_ref, wa_ref, ba_ref,
               wc1_ref, bc1_ref, wc2_ref, bc2_ref, out_ref, alpha_ref):
        bt, n_pad, d_pad = x_ref.shape
        hp = hidden_pad

        x = x_ref[...]                                     # (Bt, Np, Dp) bf16
        xf = x.reshape(bt * n_pad, d_pad)                  # all instances as rows

        # Fused gated-attention branches: one bf16 MXU matmul against [W_U | W_V],
        # f32 accumulation, then split columns for tanh / sigmoid.
        uv = (jnp.dot(xf, wuv_ref[...], preferred_element_type=jnp.float32)
              + buv_ref[...])                              # (Bt*Np, 2*Hp) f32
        a_u = jnp.tanh(uv[:, :hp])
        a_v = jax.nn.sigmoid(uv[:, hp:])
        gated = a_u * a_v                                  # (Bt*Np, Hp) f32

        # Attention logits: VPU multiply + lane reduce (no out-dim-1 MXU matmul).
        gw = gated * wa_ref[...]                           # (Bt*Np, Hp) * (1, Hp)
        e = jnp.sum(gw.reshape(bt, n_pad, hp), axis=-1) + ba_ref[0]   # (Bt, Np)

        # Mask padded instances (only traced when N was padded).
        if n_pad != n_valid:
            n_idx = jax.lax.broadcasted_iota(jnp.int32, (bt, n_pad), 1)
            e = jnp.where(n_idx < n_valid, e, -1e30)

        # Per-bag softmax over instances (lane axis).  Exact f32 division so each
        # alpha row sums to 1 (the approx reciprocal broke the normalization check).
        m = jnp.max(e, axis=-1, keepdims=True)
        p = jnp.exp(e - m)
        alpha = p / jnp.sum(p, axis=-1, keepdims=True)     # (Bt, Np) f32
        alpha_ref[...] = alpha.astype(alpha_ref.dtype)

        # Weighted bag aggregation (VPU multiply + sublane reduce).
        xw = jnp.sum(x.astype(jnp.float32) * alpha[:, :, None], axis=1)   # (Bt, Dp)

        # Classifier: Linear -> ReLU -> (Dropout = identity) -> Linear, bf16 MXU.
        h = jnp.maximum(
            jnp.dot(xw.astype(wc1_ref.dtype), wc1_ref[...],
                    preferred_element_type=jnp.float32) + bc1_ref[...], 0.0)
        out = (jnp.dot(h.astype(wc2_ref.dtype), wc2_ref[...],
                       preferred_element_type=jnp.float32) + bc2_ref[...])
        out_ref[...] = out.astype(out_ref.dtype)

    return kernel


def _pick_block_bags(batch, n_pad, d_pad, x_itemsize):
    """Bags per grid step: ~2048 instance rows, double-buffered x block under a
    v7x-safe VMEM budget, multiple of 8 unless the block covers the whole batch."""
    target_rows = 2048
    x_block_budget = 24 * 1024 * 1024          # bytes for BOTH x buffers
    max_bt = max(1, x_block_budget // (2 * n_pad * d_pad * x_itemsize))
    bt = min(max(1, target_rows // n_pad), max_bt)
    if bt >= batch:
        return batch                           # single full-extent block
    bt = max(8, (bt // 8) * 8)                 # unmasked (full-sublane) output stores
    if bt >= batch:
        return batch
    return bt


def gated_attention_mil_forward(x, params, *, block_bags=None,
                                compute_dtype=jnp.bfloat16):
    """x: (B, N, D) float32.  Returns (output (B, O), alpha (B, N, 1))."""
    B, N, D = x.shape
    H = params["wu"].shape[1]
    O = params["wc2"].shape[1]

    Dp = _round_up(D, 128)
    Hp = _round_up(H, 128)
    Op = _round_up(O, 128)
    Np = _round_up(N, 8)

    itemsize = jnp.dtype(compute_dtype).itemsize
    Bt = block_bags or _pick_block_bags(B, Np, Dp, itemsize)
    Bp = _round_up(B, Bt)

    # Zero padding is exact for this model (padded features/hidden/outputs contribute
    # 0; padded instances are masked in the softmax; padded bags are sliced off).
    # Skip the extra HBM pass over x entirely when the shapes already align.
    xq = x.astype(compute_dtype)
    if (Bp, Np, Dp) != (B, N, D):
        xq = jnp.pad(xq, ((0, Bp - B), (0, Np - N), (0, Dp - D)))

    pad2 = lambda a, r, c: jnp.pad(a, ((0, r - a.shape[0]), (0, c - a.shape[1])))
    pad_row = lambda v, c: jnp.pad(v, (0, c - v.shape[0])).reshape(1, c)

    # Fused attention-branch weights: x @ [W_U | W_V] in one 2*Hp-wide MXU pass.
    wuv = jnp.concatenate([pad2(params["wu"], Dp, Hp),
                           pad2(params["wv"], Dp, Hp)], axis=1).astype(compute_dtype)
    buv = jnp.concatenate([pad_row(params["bu"], Hp),
                           pad_row(params["bv"], Hp)], axis=1).astype(jnp.float32)
    wa = pad_row(params["watt"][:, 0], Hp).astype(jnp.float32)   # (1, Hp) row, VPU
    ba = params["batt"].reshape(1).astype(jnp.float32)           # scalar -> SMEM
    wc1 = pad2(params["wc1"], Dp, Hp).astype(compute_dtype)
    bc1 = pad_row(params["bc1"], Hp).astype(jnp.float32)
    wc2 = pad2(params["wc2"], Hp, Op).astype(compute_dtype)
    bc2 = pad_row(params["bc2"], Op).astype(jnp.float32)

    # Constant-index weight tiles: single-buffered (fetched once, never re-fetched).
    def const_spec(shape):
        return pl.BlockSpec(shape, lambda b, _n=len(shape): (0,) * _n,
                            pipeline_mode=pl.Buffered(1))

    # VMEM budget from actual buffer sizes (+ slack); cap well under any chip's VMEM.
    x_block_bytes = Bt * Np * Dp * itemsize
    w_bytes = ((wuv.size + wc1.size + wc2.size) * itemsize
               + (buv.size + wa.size + bc1.size + bc2.size) * 4)
    out_block_bytes = (Bt * Op + Bt * Np) * 4
    vmem_need = 2 * x_block_bytes + 2 * w_bytes + 2 * out_block_bytes + (1 << 20)
    vmem_limit = int(min(max(vmem_need * 5 // 4, 32 << 20), 100 << 20))

    out, alpha = pl.pallas_call(
        _make_kernel(N, Hp),
        out_shape=(
            jax.ShapeDtypeStruct((Bp, Op), jnp.float32),
            jax.ShapeDtypeStruct((Bp, Np), jnp.float32),
        ),
        grid_spec=pltpu.PrefetchScalarGridSpec(
            num_scalar_prefetch=0,
            grid=(Bp // Bt,),
            in_specs=[
                pl.BlockSpec((Bt, Np, Dp), lambda b: (b, 0, 0)),      # x block
                const_spec((Dp, 2 * Hp)),                             # [W_U | W_V]
                const_spec((1, 2 * Hp)),                              # [b_U | b_V]
                const_spec((1, Hp)),                                  # w_att row
                pl.BlockSpec(memory_space=pltpu.MemorySpace.SMEM),    # b_att scalar
                const_spec((Dp, Hp)), const_spec((1, Hp)),            # W_c1, b_c1
                const_spec((Hp, Op)), const_spec((1, Op)),            # W_c2, b_c2
            ],
            out_specs=[
                pl.BlockSpec((Bt, Op), lambda b: (b, 0)),             # logits
                pl.BlockSpec((Bt, Np), lambda b: (b, 0)),             # alpha (lane-dense)
            ],
        ),
        compiler_params=pltpu.CompilerParams(
            dimension_semantics=("parallel",),
            vmem_limit_bytes=vmem_limit),
    )(xq, wuv, buv, wa, ba, wc1, bc1, wc2, bc2)

    return out[:B, :O], alpha[:B, :N, None]


def _reference_forward(x, p):
    """Pure-JAX f32 reference matching the PyTorch GatedAttentionMIL (eval mode)."""
    a_u = jnp.tanh(x @ p["wu"] + p["bu"])
    a_v = jax.nn.sigmoid(x @ p["wv"] + p["bv"])
    gated = a_u * a_v
    e = gated @ p["watt"] + p["batt"]                     # (B, N, 1)
    alpha = jax.nn.softmax(e, axis=1)
    xw = jnp.sum(alpha * x, axis=1)                       # (B, D)
    h = jnp.maximum(xw @ p["wc1"] + p["bc1"], 0.0)
    out = h @ p["wc2"] + p["bc2"]
    return out, alpha


def _init_params(key, input_dim, hidden_dim, output_dim):
    ks = jax.random.split(key, 10)

    def lin(kw, kb, fan_in, shape_w, shape_b):
        bound = 1.0 / jnp.sqrt(fan_in)
        w = jax.random.uniform(kw, shape_w, jnp.float32, -bound, bound)
        b = jax.random.uniform(kb, shape_b, jnp.float32, -bound, bound)
        return w, b

    wu, bu = lin(ks[0], ks[1], input_dim, (input_dim, hidden_dim), (hidden_dim,))
    wv, bv = lin(ks[2], ks[3], input_dim, (input_dim, hidden_dim), (hidden_dim,))
    watt, batt = lin(ks[4], ks[5], hidden_dim, (hidden_dim, 1), (1,))
    wc1, bc1 = lin(ks[6], ks[7], input_dim, (input_dim, hidden_dim), (hidden_dim,))
    wc2, bc2 = lin(ks[8], ks[9], hidden_dim, (hidden_dim, output_dim), (output_dim,))
    return dict(wu=wu, bu=bu, wv=wv, bv=bv, watt=watt, batt=batt,
                wc1=wc1, bc1=bc1, wc2=wc2, bc2=bc2)


if __name__ == "__main__":
    # batch, instances (bag size), input_dim, hidden_dim, output_dim
    B, N, D, H, O = 2, 8, 32, 32, 2

    key = jax.random.PRNGKey(0)
    kx, kp = jax.random.split(key)
    x = jax.random.normal(kx, (B, N, D), jnp.float32)
    params = _init_params(kp, D, H, O)

    out, alpha = gated_attention_mil_forward(x, params)
    out = jax.block_until_ready(out)
    alpha = jax.block_until_ready(alpha)

    ref_out, ref_alpha = _reference_forward(x, params)
    assert out.shape == (B, O) and alpha.shape == (B, N, 1)
    # bf16 MXU operands (f32 accumulation) -> relaxed element-wise tolerances.
    assert jnp.allclose(out, ref_out, atol=2e-2, rtol=2e-2), "output mismatch"
    assert jnp.allclose(alpha, ref_alpha, atol=2e-2, rtol=2e-2), "attention mismatch"
    # Exact-divide softmax: each alpha row sums to 1 at f32 precision.
    assert jnp.allclose(jnp.sum(alpha, axis=1), 1.0, atol=1e-4), "softmax not normalized"

    print("KERNEL_OK")
</pallas_src>

<mosaic_0001>
module attributes {stable_mosaic.version = 11 : i64} {
  func.func @kernel(%arg0: i32, %arg1: memref<2x8x128xbf16, #tpu.memory_space<vmem>>, %arg2: memref<128x256xbf16, #tpu.memory_space<vmem>>, %arg3: memref<1x256xf32, #tpu.memory_space<vmem>>, %arg4: memref<1x128xf32, #tpu.memory_space<vmem>>, %arg5: memref<1xf32, #tpu.memory_space<smem>>, %arg6: memref<128x128xbf16, #tpu.memory_space<vmem>>, %arg7: memref<1x128xf32, #tpu.memory_space<vmem>>, %arg8: memref<128x128xbf16, #tpu.memory_space<vmem>>, %arg9: memref<1x128xf32, #tpu.memory_space<vmem>>, %arg10: memref<2x128xf32, #tpu.memory_space<vmem>>, %arg11: memref<2x8xf32, #tpu.memory_space<vmem>>) attributes {dimension_semantics = [#tpu.dimension_semantics<parallel>], iteration_bounds = array<i64: 1>, scalar_prefetch = 0 : i64, scratch_operands = 0 : i64, tpu.core_type = #tpu.core_type<tc>, window_params = [{transform_indices = @transform_0, window_bounds = array<i64: 2, 8, 128>}, {pipeline_mode = #tpu.pipeline_mode<synchronous>, transform_indices = @transform_1, window_bounds = array<i64: 128, 256>}, {pipeline_mode = #tpu.pipeline_mode<synchronous>, transform_indices = @transform_2, window_bounds = array<i64: 1, 256>}, {pipeline_mode = #tpu.pipeline_mode<synchronous>, transform_indices = @transform_3, window_bounds = array<i64: 1, 128>}, {transform_indices = @transform_4, window_bounds = array<i64: 1>}, {pipeline_mode = #tpu.pipeline_mode<synchronous>, transform_indices = @transform_5, window_bounds = array<i64: 128, 128>}, {pipeline_mode = #tpu.pipeline_mode<synchronous>, transform_indices = @transform_6, window_bounds = array<i64: 1, 128>}, {pipeline_mode = #tpu.pipeline_mode<synchronous>, transform_indices = @transform_7, window_bounds = array<i64: 128, 128>}, {pipeline_mode = #tpu.pipeline_mode<synchronous>, transform_indices = @transform_8, window_bounds = array<i64: 1, 128>}, {transform_indices = @transform_9, window_bounds = array<i64: 2, 128>}, {transform_indices = @transform_10, window_bounds = array<i64: 2, 8>}]} {
    %c0 = arith.constant 0 : index
    %c0_0 = arith.constant 0 : index
    %c0_1 = arith.constant 0 : index
    %0 = vector.load %arg1[%c0, %c0_0, %c0_1] : memref<2x8x128xbf16, #tpu.memory_space<vmem>>, vector<2x8x128xbf16>
    %1 = vector.shape_cast %0 : vector<2x8x128xbf16> to vector<16x128xbf16>
    %c0_2 = arith.constant 0 : index
    %c0_3 = arith.constant 0 : index
    %2 = vector.load %arg2[%c0_2, %c0_3] : memref<128x256xbf16, #tpu.memory_space<vmem>>, vector<128x256xbf16>
    %cst = arith.constant dense<0.000000e+00> : vector<16x256xf32>
    %3 = tpu.matmul %1, %2, %cst {dimension_numbers = #tpu.dot_dimension_numbers<[1], [0], [0], [1], [0, 0, 1, 1], [], []>} : vector<16x128xbf16>, vector<128x256xbf16>, vector<16x256xf32> -> vector<16x256xf32>
    %c0_4 = arith.constant 0 : index
    %c0_5 = arith.constant 0 : index
    %4 = vector.load %arg3[%c0_4, %c0_5] : memref<1x256xf32, #tpu.memory_space<vmem>>, vector<1x256xf32>
    %5 = vector.broadcast %4 : vector<1x256xf32> to vector<16x256xf32>
    %6 = arith.addf %3, %5 : vector<16x256xf32>
    %7 = vector.extract_strided_slice %6 {offsets = [0, 0], sizes = [16, 128], strides = [1, 1]} : vector<16x256xf32> to vector<16x128xf32>
    %8 = math.tanh %7 : vector<16x128xf32>
    %9 = vector.extract_strided_slice %6 {offsets = [0, 128], sizes = [16, 128], strides = [1, 1]} : vector<16x256xf32> to vector<16x128xf32>
    %10 = arith.negf %9 : vector<16x128xf32>
    %11 = math.exp %10 : vector<16x128xf32>
    %cst_6 = arith.constant 1.000000e+00 : f32
    %12 = vector.broadcast %cst_6 : f32 to vector<16x128xf32>
    %13 = arith.addf %12, %11 : vector<16x128xf32>
    %14 = arith.divf %12, %13 : vector<16x128xf32>
    %15 = arith.mulf %8, %14 : vector<16x128xf32>
    %c0_7 = arith.constant 0 : index
    %c0_8 = arith.constant 0 : index
    %16 = vector.load %arg4[%c0_7, %c0_8] : memref<1x128xf32, #tpu.memory_space<vmem>>, vector<1x128xf32>
    %17 = vector.broadcast %16 : vector<1x128xf32> to vector<16x128xf32>
    %18 = arith.mulf %15, %17 : vector<16x128xf32>
    %19 = vector.shape_cast %18 : vector<16x128xf32> to vector<2x8x128xf32>
    %cst_9 = arith.constant dense<0.000000e+00> : vector<2x8xf32>
    %20 = vector.multi_reduction <add>, %19, %cst_9 [2] : vector<2x8x128xf32> to vector<2x8xf32>
    %c0_10 = arith.constant 0 : index
    %21 = memref.load %arg5[%c0_10] : memref<1xf32, #tpu.memory_space<smem>>
    %22 = vector.broadcast %21 : f32 to vector<2x8xf32>
    %23 = arith.addf %20, %22 : vector<2x8xf32>
    %cst_11 = arith.constant dense<0xFF800000> : vector<2xf32>
    %24 = vector.multi_reduction <maximumf>, %23, %cst_11 [1] : vector<2x8xf32> to vector<2xf32>
    %25 = vector.shape_cast %24 : vector<2xf32> to vector<2x1xf32>
    %26 = vector.broadcast %25 : vector<2x1xf32> to vector<2x8xf32>
    %27 = arith.subf %23, %26 : vector<2x8xf32>
    %28 = math.exp %27 : vector<2x8xf32>
    %cst_12 = arith.constant dense<0.000000e+00> : vector<2xf32>
    %29 = vector.multi_reduction <add>, %28, %cst_12 [1] : vector<2x8xf32> to vector<2xf32>
    %30 = vector.shape_cast %29 : vector<2xf32> to vector<2x1xf32>
    %31 = vector.broadcast %30 : vector<2x1xf32> to vector<2x8xf32>
    %32 = arith.divf %28, %31 : vector<2x8xf32>
    %c0_13 = arith.constant 0 : index
    %c0_14 = arith.constant 0 : index
    %33 = vector.load %arg11[%c0_13, %c0_14] : memref<2x8xf32, #tpu.memory_space<vmem>>, vector<2x8xf32>
    tpu.vector_store %arg11[%c0_13, %c0_14], %32 {strides = array<i32>} : memref<2x8xf32, #tpu.memory_space<vmem>>, vector<2x8xf32>,
    %34 = arith.extf %0 : vector<2x8x128xbf16> to vector<2x8x128xf32>
    %35 = vector.shape_cast %32 : vector<2x8xf32> to vector<2x8x1xf32>
    %36 = vector.broadcast %35 : vector<2x8x1xf32> to vector<2x8x128xf32>
    %37 = arith.mulf %34, %36 : vector<2x8x128xf32>
    %cst_15 = arith.constant dense<0.000000e+00> : vector<2x128xf32>
    %38 = vector.multi_reduction <add>, %37, %cst_15 [1] : vector<2x8x128xf32> to vector<2x128xf32>
    %39 = arith.truncf %38 : vector<2x128xf32> to vector<2x128xbf16>
    %c0_16 = arith.constant 0 : index
    %c0_17 = arith.constant 0 : index
    %40 = vector.load %arg6[%c0_16, %c0_17] : memref<128x128xbf16, #tpu.memory_space<vmem>>, vector<128x128xbf16>
    %cst_18 = arith.constant dense<0.000000e+00> : vector<2x128xf32>
    %41 = tpu.matmul %39, %40, %cst_18 {dimension_numbers = #tpu.dot_dimension_numbers<[1], [0], [0], [1], [0, 0, 1, 1], [], []>} : vector<2x128xbf16>, vector<128x128xbf16>, vector<2x128xf32> -> vector<2x128xf32>
    %c0_19 = arith.constant 0 : index
    %c0_20 = arith.constant 0 : index
    %42 = vector.load %arg7[%c0_19, %c0_20] : memref<1x128xf32, #tpu.memory_space<vmem>>, vector<1x128xf32>
    %43 = vector.broadcast %42 : vector<1x128xf32> to vector<2x128xf32>
    %44 = arith.addf %41, %43 : vector<2x128xf32>
    %cst_21 = arith.constant 0.000000e+00 : f32
    %45 = vector.broadcast %cst_21 : f32 to vector<2x128xf32>
    %46 = arith.maximumf %44, %45 : vector<2x128xf32>
    %47 = arith.truncf %46 : vector<2x128xf32> to vector<2x128xbf16>
    %c0_22 = arith.constant 0 : index
    %c0_23 = arith.constant 0 : index
    %48 = vector.load %arg8[%c0_22, %c0_23] : memref<128x128xbf16, #tpu.memory_space<vmem>>, vector<128x128xbf16>
    %cst_24 = arith.constant dense<0.000000e+00> : vector<2x128xf32>
    %49 = tpu.matmul %47, %48, %cst_24 {dimension_numbers = #tpu.dot_dimension_numbers<[1], [0], [0], [1], [0, 0, 1, 1], [], []>} : vector<2x128xbf16>, vector<128x128xbf16>, vector<2x128xf32> -> vector<2x128xf32>
    %c0_25 = arith.constant 0 : index
    %c0_26 = arith.constant 0 : index
    %50 = vector.load %arg9[%c0_25, %c0_26] : memref<1x128xf32, #tpu.memory_space<vmem>>, vector<1x128xf32>
    %51 = vector.broadcast %50 : vector<1x128xf32> to vector<2x128xf32>
    %52 = arith.addf %49, %51 : vector<2x128xf32>
    %c0_27 = arith.constant 0 : index
    %c0_28 = arith.constant 0 : index
    %53 = vector.load %arg10[%c0_27, %c0_28] : memref<2x128xf32, #tpu.memory_space<vmem>>, vector<2x128xf32>
    tpu.vector_store %arg10[%c0_27, %c0_28], %52 {strides = array<i32>} : memref<2x128xf32, #tpu.memory_space<vmem>>, vector<2x128xf32>,
    return
  }
  func.func @transform_0(%arg0: i32) -> (i32, i32, i32) {
    %c0_i32 = arith.constant 0 : i32
    %c0_i32_0 = arith.constant 0 : i32
    %c0_i32_1 = arith.constant 0 : i32
    return %arg0, %c0_i32, %c0_i32_0 : i32, i32, i32
  }
  func.func @transform_1(%arg0: i32) -> (i32, i32) {
    %c0_i32 = arith.constant 0 : i32
    %c0_i32_0 = arith.constant 0 : i32
    %c0_i32_1 = arith.constant 0 : i32
    return %c0_i32, %c0_i32_0 : i32, i32
  }
  func.func @transform_2(%arg0: i32) -> (i32, i32) {
    %c0_i32 = arith.constant 0 : i32
    %c0_i32_0 = arith.constant 0 : i32
    %c0_i32_1 = arith.constant 0 : i32
    return %c0_i32, %c0_i32_0 : i32, i32
  }
  func.func @transform_3(%arg0: i32) -> (i32, i32) {
    %c0_i32 = arith.constant 0 : i32
    %c0_i32_0 = arith.constant 0 : i32
    %c0_i32_1 = arith.constant 0 : i32
    return %c0_i32, %c0_i32_0 : i32, i32
  }
  func.func @transform_4(%arg0: i32) -> i32 {
    %c0_i32 = arith.constant 0 : i32
    %c0_i32_0 = arith.constant 0 : i32
    return %c0_i32 : i32
  }
  func.func @transform_5(%arg0: i32) -> (i32, i32) {
    %c0_i32 = arith.constant 0 : i32
    %c0_i32_0 = arith.constant 0 : i32
    %c0_i32_1 = arith.constant 0 : i32
    return %c0_i32, %c0_i32_0 : i32, i32
  }
  func.func @transform_6(%arg0: i32) -> (i32, i32) {
    %c0_i32 = arith.constant 0 : i32
    %c0_i32_0 = arith.constant 0 : i32
    %c0_i32_1 = arith.constant 0 : i32
    return %c0_i32, %c0_i32_0 : i32, i32
  }
  func.func @transform_7(%arg0: i32) -> (i32, i32) {
    %c0_i32 = arith.constant 0 : i32
    %c0_i32_0 = arith.constant 0 : i32
    %c0_i32_1 = arith.constant 0 : i32
    return %c0_i32, %c0_i32_0 : i32, i32
  }
  func.func @transform_8(%arg0: i32) -> (i32, i32) {
    %c0_i32 = arith.constant 0 : i32
    %c0_i32_0 = arith.constant 0 : i32
    %c0_i32_1 = arith.constant 0 : i32
    return %c0_i32, %c0_i32_0 : i32, i32
  }
  func.func @transform_9(%arg0: i32) -> (i32, i32) {
    %c0_i32 = arith.constant 0 : i32
    %c0_i32_0 = arith.constant 0 : i32
    return %arg0, %c0_i32 : i32, i32
  }
  func.func @transform_10(%arg0: i32) -> (i32, i32) {
    %c0_i32 = arith.constant 0 : i32
    %c0_i32_0 = arith.constant 0 : i32
    return %arg0, %c0_i32 : i32, i32
  }
}

</mosaic_0001>

<bundles_post_ra>
// kernel: tpu_custom_call.1
= control target key start
LH: loop header
LB: loop body
LE: loop exit
PB: predicated region body
PF: predicated region fallthrough
CT: control target
= control target key end

     0   :  { %17 = vsyncpa [#allocation4], 0  ;;  %s1080_s0 = inlined_call_operand.hbm [shape: bf16[2,8,128], index: 0, kind: input, shape index: {}]   ;;  %s1081_s1 = inlined_call_operand.hbm [shape: bf16[128,256], index: 1, kind: input, shape index: {}]   ;;  %s1082_s2 = inlined_call_operand.vmem [shape: f32[1,256], index: 2, kind: input, shape index: {}]   ;;  %s1083_s3 = inlined_call_operand.vmem [shape: f32[1,128], index: 3, kind: input, shape index: {}]   ;;  %s1084_s4 = inlined_call_operand.<no memory space> [shape: f32[1], index: 4, kind: input, shape index: {}]   ;;  %s1085_s5 = inlined_call_operand.hbm [shape: bf16[128,128], index: 5, kind: input, shape index: {}]   ;;  %s1086_s6 = inlined_call_operand.vmem [shape: f32[1,128], index: 6, kind: input, shape index: {}]   ;;  %s1087_s7 = inlined_call_operand.hbm [shape: bf16[128,128], index: 7, kind: input, shape index: {}]   ;;  %s1088_s8 = inlined_call_operand.vmem [shape: f32[1,128], index: 8, kind: input, shape index: {}]   ;;  %s1089_s9 = inlined_call_operand.hbm [shape: f32[2,128], index: 9, kind: output, shape index: {0}]   ;;  %s1090_s10 = inlined_call_operand.hbm [shape: f32[2,8], index: 10, kind: output, shape index: {1}]  }
   0x1   :  { %18 = vsyncpa [#allocation7], 0 }
   0x2   :  { %19 = vsyncpa [#allocation10], 0 }
   0x3   :  { %20 = vsyncpa [#allocation5], 0  ;;  %s39_s15 = sshll.u32 %s1081_s1, 4  ;;  %s40_s15 = int_to_ptr.hbm [resolvable:$true] %s39_s15 }
   0x4   :  { %21 = vsyncpa [#allocation13], 0  ;;  %s966_s16 = smov [#allocation6]   ;;  %s26_s20 = sshll.u32 %s1080_s0, 4  ;;  %s27_s20 = int_to_ptr.hbm [resolvable:$true] %s26_s20 }
   0x5   :  { %s41_s17 = sshll.u32 %s966_s16, 4  ;;  %s967_s21 = smov 128   ;;  %s42_s17 = int_to_ptr.vmem [resolvable:$true] %s41_s17 }
   0x6   :  { %s968_s22 = smov 8   ;;  %s969_s23 = smov [#allocation3]  }
   0x7   :  { %47 = dma.hbm_to_vmem [thread:$0]  %s40_s15, 2048, %s42_s17, [#allocation7], %s967_s21, %s967_s21, %s968_s22  }
   0x8   :  { %s28_s24 = sshll.u32 %s969_s23, 4  ;;  %s970_s25 = smov 64   ;;  %s29_s24 = int_to_ptr.vmem [resolvable:$true] %s28_s24 }
   0x9   :  { %s971_s26 = smov 4   ;;  %s58_s28 = sshll.u32 %s1085_s5, 4  ;;  %s59_s28 = int_to_ptr.hbm [resolvable:$true] %s58_s28 }
   0xa   :  { %34 = dma.hbm_to_vmem [thread:$0]  %s27_s20, 128, %s29_s24, [#allocation4], %s970_s25, %s970_s25, %s971_s26  }
   0xb   :  { %s972_s29 = smov [#allocation8]   ;;  %s73_s12 = sshll.u32 %s1087_s7, 4  ;;  %s74_s12 = int_to_ptr.hbm [resolvable:$true] %s73_s12 }
   0xc   :  { %s60_s30 = sshll.u32 %s972_s29, 4  ;;  %s973_s13 = smov [#allocation9]   ;;  %s61_s30 = int_to_ptr.vmem [resolvable:$true] %s60_s30 }
   0xd   :  { %66 = dma.hbm_to_vmem [thread:$0]  %s59_s28, 1024, %s61_s30, [#allocation7], %s970_s25, %s970_s25, %s971_s26  }
   0xe   :  { %s75_s14 = sshll.u32 %s973_s13, 4  ;;  %s76_s14 = int_to_ptr.vmem [resolvable:$true] %s75_s14 }
   0xf   :  { %81 = dma.hbm_to_vmem [thread:$0]  %s74_s12, 1024, %s76_s14, [#allocation10], %s970_s25, %s970_s25, %s971_s26  }
  0x10   :  { %956 = dma.done.wait [#allocation4], 128  }
  0x11   :  { %957 = vsyncadd [#allocation4], 4294967168 }
  0x12   :  { %958 = dma.done.wait [#allocation7], 3072  }
  0x13   :  { %959 = vsyncadd [#allocation7], 4294964224 }
  0x14   :  { %960 = dma.done.wait [#allocation10], 1024  }
  0x15   :  { %961 = vsyncadd [#allocation10], 4294966272  ;;  %v757_v0 = vld [vmem:[#allocation6 + $0x74] sm:$0xf]  ;;  %v672_v1 = vld [vmem:[#allocation6 + $0x78] sm:$0xf0] }
  0x16   :  { %v755_v2 = vld [vmem:[#allocation6 + $0x64] sm:$0xf]  ;;  %v675_v3 = vor.u32 %v757_v0, %v672_v1  ;;  %v664_v4 = vld [vmem:[#allocation6 + $0x68] sm:$0xf0]  ;;  %v670_v5 = vld [vmem:[#allocation6 + $0x70] sm:$0xf] }
  0x17   :  { %v667_v6 = vor.u32 %v755_v2, %v664_v4  ;;  %v753_v7 = vld [vmem:[#allocation6 + $0x54] sm:$0xf]  ;;  %v758_v8 = vld [vmem:[#allocation6 + $0x74] sm:$0xf0]  ;;  %v656_v9 = vld [vmem:[#allocation6 + $0x58] sm:$0xf0] }
  0x18   :  { %224 = vmatpush.bf16.msra.mxu1 %v675_v3  ;;  %v671_v10 = vor.u32 %v758_v8, %v670_v5  ;;  %v662_v11 = vld [vmem:[#allocation6 + $0x60] sm:$0xf]  ;;  %v756_v12 = vld [vmem:[#allocation6 + $0x64] sm:$0xf0]  ;;  %v659_v14 = vor.u32 %v753_v7, %v656_v9  ;;  %v654_v15 = vld [vmem:[#allocation6 + $0x50] sm:$0xf] }
  0x19   :  { %v663_v13 = vor.u32 %v756_v12, %v662_v11  ;;  %v754_v16 = vld [vmem:[#allocation6 + $0x54] sm:$0xf0]  ;;  %v751_v17 = vld [vmem:[#allocation6 + $0x44] sm:$0xf]  ;;  %v648_v18 = vld [vmem:[#allocation6 + $0x48] sm:$0xf0] }
  0x1a   :  { %210 = vmatpush.bf16.msra.mxu0 %v671_v10  ;;  %v655_v19 = vor.u32 %v754_v16, %v654_v15  ;;  %v646_v20 = vld [vmem:[#allocation6 + $0x40] sm:$0xf]  ;;  %v651_v21 = vor.u32 %v751_v17, %v648_v18  ;;  %v752_v22 = vld [vmem:[#allocation6 + $0x44] sm:$0xf0]  ;;  %v749_v23 = vld [vmem:[#allocation6 + $0x34] sm:$0xf] }
  0x1b   :  { %v640_v24 = vld [vmem:[#allocation6 + $0x38] sm:$0xf0]  ;;  %v647_v25 = vor.u32 %v752_v22, %v646_v20  ;;  %v638_v27 = vld [vmem:[#allocation6 + $0x30] sm:$0xf]  ;;  %v750_v28 = vld [vmem:[#allocation6 + $0x34] sm:$0xf0] }
  0x1c   :  { %225 = vmatpush.bf16.msra.mxu1 %v667_v6  ;;  %v643_v26 = vor.u32 %v749_v23, %v640_v24  ;;  %v747_v29 = vld [vmem:[#allocation6 + $0x24] sm:$0xf]  ;;  %v632_v30 = vld [vmem:[#allocation6 + $0x28] sm:$0xf0]  ;;  %v639_v31 = vor.u32 %v750_v28, %v638_v27  ;;  %v630_v33 = vld [vmem:[#allocation6 + $0x20] sm:$0xf] }
  0x1d   :  { %v635_v32 = vor.u32 %v747_v29, %v632_v30  ;;  %v748_v34 = vld [vmem:[#allocation6 + $0x24] sm:$0xf0]  ;;  %v745_v35 = vld [vmem:[#allocation6 + $0x14] sm:$0xf]  ;;  %v624_v36 = vld [vmem:[#allocation6 + $0x18] sm:$0xf0]  ;;  %v296_v30 = vlaneseq }
  0x1e   :  { %211 = vmatpush.bf16.msra.mxu0 %v663_v13  ;;  %v631_v37 = vor.u32 %v748_v34, %v630_v33  ;;  %v627_v38 = vor.u32 %v745_v35, %v624_v36  ;;  %v622_v39 = vld [vmem:[#allocation6 + $0x10] sm:$0xf]  ;;  %v746_v40 = vld [vmem:[#allocation6 + $0x14] sm:$0xf0]  ;;  %v743_v41 = vld [vmem:[#allocation6 + $0x4] sm:$0xf] }
  0x1f   :  { %v616_v42 = vld [vmem:[#allocation6 + $0x8] sm:$0xf0]  ;;  %v623_v43 = vor.u32 %v746_v40, %v622_v39  ;;  %v614_v45 = vld [vmem:[#allocation6] sm:$0xf]  ;;  %v744_v46 = vld [vmem:[#allocation6 + $0x4] sm:$0xf0] }
  0x20   :  { %226 = vmatpush.bf16.msra.mxu1 %v659_v14  ;;  %v619_v44 = vor.u32 %v743_v41, %v616_v42  ;;  %v742_v47 = vld [vmem:[#allocation3] sm:$0xff]  ;;  %v615_v48 = vor.u32 %v744_v46, %v614_v45  ;;  %vm300_vm8 = vcmask 1041409   ;;  %vm303_vm9 = vcmask 58368   ;;  %s975_s18 = smov [#allocation12]   ;;  %s591_s22 = sshll.u32 %s1090_s10, 4  ;;  %s592_s22 = int_to_ptr.hbm [resolvable:$true] %s591_s22 }
  0x21   :  { %v118_v49 = vld [vmem:[%s1082_s2] sm:$0x3]  ;;  %v974_v40 = vmov 0   ;;  %s589_s19 = sshll.u32 %s975_s18, 4  ;;  %s580_s27 = sshll.u32 %s1089_s9, 4  ;;  %s590_s19 = int_to_ptr.vmem [resolvable:$true] %s589_s19  ;;  %s581_s27 = int_to_ptr.hbm [resolvable:$true] %s580_s27 }
  0x22   :  { %212 = vmatpush.bf16.msra.mxu0 %v655_v19  ;;  %v121_v50 = vperm.slane %v118_v49, 1  ;;  %v120_v59 = vperm.slane %v118_v49, 0  ;;  %v789_v13 = vld [vmem:[%s1083_s3] ss:$0 sm:$0xff]  ;;  %787 = vset.pattern.permute.xlu2 %v974_v40 }
  0x23   :  { %786 = vset.pattern.permute.xlu1 %v974_v40  ;;  %788 = vset.pattern.permute.xlu0 %v974_v40 }
  0x24   :  { %227 = vmatpush.bf16.msra.mxu1 %v651_v21 }
  0x26   :  { %213 = vmatpush.bf16.msra.mxu0 %v647_v25 }
  0x28   :  { %228 = vmatpush.bf16.msra.mxu1 %v643_v26 }
  0x2a   :  { %214 = vmatpush.bf16.msra.mxu0 %v639_v31  ;;  %v291_v31 = vstv %s1084_s4 }
  0x2c   :  { %229 = vmatpush.bf16.msra.mxu1 %v635_v32  ;;  %v1053_v32 = vand.u32 127, %v296_v30 }
  0x2e   :  { %215 = vmatpush.bf16.msra.mxu0 %v631_v37 }
  0x30   :  { %230 = vmatpush.bf16.msra.mxu1 %v627_v38 }
  0x32   :  { %216 = vmatpush.bf16.msra.mxu0 %v623_v43 }
  0x34   :  { %231 = vmatpush.bf16.msra.mxu1 %v619_v44 }
  0x36   :  { %217 = vmatpush.bf16.msra.mxu0 %v615_v48 }
  0x37   :  { %232 = vmatmul.bf16.vlgmr.msra.gmra.mxu1 %v742_v47 }
  0x39   :  { %218 = vmatmul.bf16.vlgmr.msra.gmra.mxu0 %v742_v47 }
  0xb4   :  { %v233_v51 = vpop.f32.mrf.mxu1 }
  0xb5   :  { %v234_v52 = vadd.f32 %v233_v51, %v121_v50 }
  0xb6   :  { %v219_v60 = vpop.f32.mrf.mxu0 }
  0xb7   :  { %v676_v53 = vmul.f32 -1.442695, %v234_v52  ;;  %v220_v61 = vadd.f32 %v219_v60, %v120_v59 }
  0xb9   :  { %792 = vpow2.f32 %v676_v53 }
  0xbc   :  { %v235_v54 = vpop.f32.mrf.mxu1 }
  0xbd   :  { %v236_v55 = vadd.f32 %v235_v54, %v121_v50 }
  0xbe   :  { %v221_v4 = vpop.f32.mrf.mxu0 }
  0xbf   :  { %v793_v56 = vpop.eup %792  ;;  %v677_v57 = vmul.f32 -1.442695, %v236_v55  ;;  %v222_v10 = vadd.f32 %v221_v4, %v120_v59 }
  0xc0   :  { %v246_v58 = vadd.f32 1.0, %v793_v56  ;;  %v766_v56 = vld [vmem:[#allocation8 + $0x38] sm:$0xff] }
  0xc1   :  { %794 = vpow2.f32 %v677_v57  ;;  %476 = vmatpush.bf16.msra.mxu2 %v766_v56  ;;  %v765_v57 = vld [vmem:[#allocation8 + $0x30] sm:$0xff] }
  0xc2   :  { %796 = vrcp.f32 %v246_v58  ;;  %v259_v3 = vand.u32 2147483648, %v246_v58  ;;  %v257_v6 = vand.u32 2147483647, %v246_v58  ;;  %vm253_vm1 = vweird.f32 %v246_v58 }
  0xc3   :  { %798 = vtanh.f32 %v220_v61 }
  0xc4   :  { %v260_v11 = vor.u32 1.1754944e-38, %v259_v3  ;;  %vm258_vm3 = vcmp.eq.f32.partialorder %v257_v6, 8.507059e+37 }
  0xc5   :  { %477 = vmatpush.bf16.msra.mxu2 %v765_v57 }
  0xc7   :  { %v795_v62 = vpop.eup %794 }
  0xc8   :  { %v797_v63 = vpop.eup %796  ;;  %v247_v0 = vadd.f32 1.0, %v795_v62 }
  0xc9   :  { %v249_v1 = vmul.f32 %v797_v63, %v246_v58  ;;  %vm254_vm0 = vweird.f32 %v797_v63  ;;  %v799_v7 = vpop.eup %798  ;;  %v764_v58 = vld [vmem:[#allocation8 + $0x28] sm:$0xff] }
  0xca   :  { %800 = vrcp.f32 %v247_v0  ;;  %vm255_vm2 = vmor %vm253_vm1, %vm254_vm0  ;;  %v274_v18 = vand.u32 2147483648, %v247_v0  ;;  %v272_v21 = vand.u32 2147483647, %v247_v0  ;;  %vm268_vm5 = vweird.f32 %v247_v0  ;;  %478 = vmatpush.bf16.msra.mxu2 %v764_v58 }
  0xcb   :  { %v250_v2 = vsub.f32 1.0, %v249_v1  ;;  %802 = vtanh.f32 %v222_v10 }
  0xcc   :  { %v275_v23 = vor.u32 1.1754944e-38, %v274_v18  ;;  %vm273_vm7 = vcmp.eq.f32.partialorder %v272_v21, 8.507059e+37  ;;  %v762_v21 = vld [vmem:[#allocation8 + $0x18] sm:$0xff] }
  0xcd   :  { %v251_v5 = vmul.f32 %v797_v63, %v250_v2 }
  0xcf   :  { %v252_v8 = vadd.f32 %v797_v63, %v251_v5 }
  0xd0   :  { %v801_v9 = vpop.eup %800 }
  0xd1   :  { %v256_v12 = vsel %vm255_vm2, %v797_v63, %v252_v8  ;;  %v264_v14 = vmul.f32 %v801_v9, %v247_v0  ;;  %vm269_vm4 = vweird.f32 %v801_v9  ;;  %v803_v25 = vpop.eup %802 }
  0xd2   :  { %v261_v15 = vsel %vm258_vm3, %v260_v11, %v256_v12  ;;  %vm270_vm6 = vmor %vm268_vm5, %vm269_vm4 }
  0xd3   :  { %v278_v16 = vmul.f32 %v799_v7, %v261_v15  ;;  %v265_v17 = vsub.f32 1.0, %v264_v14 }
  0xd5   :  { %v284_v19 = vmul.f32 %v789_v13, %v278_v16  ;;  %v266_v20 = vmul.f32 %v801_v9, %v265_v17 }
  0xd7   :  { %286 = vadd.xlane.f32.xlu0 %v284_v19  ;;  %v267_v22 = vadd.f32 %v801_v9, %v266_v20  ;;  %v763_v20 = vld [vmem:[#allocation8 + $0x20] sm:$0xff] }
  0xd8   :  { %479 = vmatpush.bf16.msra.mxu2 %v763_v20 }
  0xd9   :  { %v271_v24 = vsel %vm270_vm6, %v801_v9, %v267_v22  ;;  %v761_v22 = vld [vmem:[#allocation8 + $0x10] sm:$0xff] }
  0xda   :  { %v276_v26 = vsel %vm273_vm7, %v275_v23, %v271_v24  ;;  %v760_v23 = vld [vmem:[#allocation8 + $0x8] sm:$0xff]  ;;  %v759_v24 = vld [vmem:[#allocation8] sm:$0xff] }
  0xdb   :  { %v279_v27 = vmul.f32 %v803_v25, %v276_v26  ;;  %v774_v25 = vld [vmem:[#allocation9 + $0x38] sm:$0xff]  ;;  %v773_v26 = vld [vmem:[#allocation9 + $0x30] sm:$0xff] }
  0xdc   :  { %480 = vmatpush.bf16.msra.mxu2 %v762_v21  ;;  %559 = vmatpush.bf16.msra.mxu3 %v774_v25 }
  0xdd   :  { %v285_v28 = vmul.f32 %v789_v13, %v279_v27  ;;  %v101_v27 = vld [vmem:[#allocation3] sm:$0xff]  }
  0xde   :  { %v382_v30 = vunpack.c.h.bf16 %v101_v27 }
  0xdf   :  { %288 = vadd.xlane.f32.xlu0 %v285_v28  ;;  %v381_v28 = vunpack.c.l.bf16 %v101_v27 }
  0xe0   :  { %481 = vmatpush.bf16.msra.mxu2 %v761_v22  ;;  %560 = vmatpush.bf16.msra.mxu3 %v773_v26 }
  0xe4   :  { %482 = vmatpush.bf16.msra.mxu2 %v760_v23 }
  0xe8   :  { %483 = vmatpush.bf16.msra.mxu2 %v759_v24 }
 0x14a   :  { %v287_v29 = vpop.xlane.xlu0 %286 }
 0x14b   :  { %v292_v33 = vadd.f32 %v291_v31, %v287_v29  ;;  %v772_v29 = vld [vmem:[#allocation9 + $0x28] sm:$0xff] }
 0x14c   :  { %561 = vmatpush.bf16.msra.mxu3 %v772_v29 }
 0x14d   :  { %v298_v36 = vperm.slane %v292_v33, %v1053_v32 }
 0x152   :  { %v289_v34 = vpop.xlane.xlu0 %288 }
 0x153   :  { %v293_v35 = vadd.f32 %v291_v31, %v289_v34 }
 0x155   :  { %v299_v37 = vperm.slane %v293_v35, %v1053_v32 }
 0x157   :  { %v301_v38 = vsel %vm300_vm8, %v299_v37, %v298_v36  ;;  %v771_v36 = vld [vmem:[#allocation9 + $0x20] sm:$0xff] }
 0x158   :  { %v304_v39 = vsel %vm303_vm9, %v301_v38, -inf  ;;  %562 = vmatpush.bf16.msra.mxu3 %v771_v36 }
 0x159   :  { %305 = vmax.xlane.f32.xlu1 %v304_v39 }
 0x1cc   :  { %v306_v41 = vpop.xlane.xlu1 %305 }
 0x1cd   :  { %v308_v42 = vperm.slane %v306_v41, 0  ;;  %v309_v43 = vperm.slane %v306_v41, 1 }
 0x1cf   :  { %v312_v44 = vsub.f32 %v292_v33, %v308_v42  ;;  %v313_v45 = vsub.f32 %v293_v35, %v309_v43  ;;  %v770_v43 = vld [vmem:[#allocation9 + $0x18] sm:$0xff] }
 0x1d0   :  { %563 = vmatpush.bf16.msra.mxu3 %v770_v43 }
 0x1d1   :  { %v314_v46 = vmul.f32 1.442695, %v312_v44  ;;  %v316_v47 = vmul.f32 1.442695, %v313_v45 }
 0x1d3   :  { %804 = vpow2.f32 %v314_v46 }
 0x1d4   :  { %806 = vpow2.f32 %v316_v47 }
 0x1d9   :  { %v805_v48 = vpop.eup %804 }
 0x1da   :  { %v807_v49 = vpop.eup %806  ;;  %321 = vperm.xlu1 %786, %v805_v48  }
 0x1db   :  { %324 = vperm.xlu2 %787, %v807_v49  }
 0x235   :  { %v325_v50 = vpop.permute.xlu2 %324 }
 0x236   :  { %v327_v52 = vperm.slane %v325_v50, %v1053_v32 }
 0x24c   :  { %v322_v51 = vpop.permute.xlu1 %321 }
 0x24d   :  { %v326_v53 = vperm.slane %v322_v51, %v1053_v32 }
 0x24f   :  { %v328_v54 = vsel %vm300_vm8, %v327_v52, %v326_v53 }
 0x250   :  { %v330_v55 = vsel %vm303_vm9, %v328_v54, 0.0 }
 0x251   :  { %331 = vadd.xlane.f32.xlu2 %v330_v55 }
 0x2c4   :  { %v332_v59 = vpop.xlane.xlu2 %331 }
 0x2c5   :  { %v334_v60 = vperm.slane %v332_v59, 0  ;;  %v335_v61 = vperm.slane %v332_v59, 1  ;;  %v768_v59 = vld [vmem:[#allocation9 + $0x8] sm:$0xff] }
 0x2c7   :  { %808 = vrcp.f32 %v334_v60  ;;  %v349_v4 = vand.u32 2147483648, %v334_v60  ;;  %v364_v5 = vand.u32 2147483648, %v335_v61  ;;  %v347_v7 = vand.u32 2147483647, %v334_v60 }
 0x2c8   :  { %810 = vrcp.f32 %v335_v61  ;;  %v362_v9 = vand.u32 2147483647, %v335_v61  ;;  %vm343_vm12 = vweird.f32 %v334_v60  ;;  %vm358_vm13 = vweird.f32 %v335_v61 }
 0x2c9   :  { %v350_v12 = vor.u32 1.1754944e-38, %v349_v4  ;;  %v365_v13 = vor.u32 1.1754944e-38, %v364_v5  ;;  %vm348_vm0 = vcmp.eq.f32.partialorder %v347_v7, 8.507059e+37 }
 0x2ca   :  { %vm363_vm1 = vcmp.eq.f32.partialorder %v362_v9, 8.507059e+37 }
 0x2cd   :  { %v809_v62 = vpop.eup %808 }
 0x2ce   :  { %v811_v63 = vpop.eup %810  ;;  %v339_v0 = vmul.f32 %v809_v62, %v334_v60  ;;  %vm344_vm10 = vweird.f32 %v809_v62  ;;  %v767_v60 = vld [vmem:[#allocation9] sm:$0xff] }
 0x2cf   :  { %v354_v1 = vmul.f32 %v811_v63, %v335_v61  ;;  %vm359_vm11 = vweird.f32 %v811_v63  ;;  %vm345_vm14 = vmor %vm343_vm12, %vm344_vm10  ;;  %v790_v61 = vld [vmem:[%s1086_s6] ss:$0 sm:$0xff]  ;;  %s976_s6 = smov [#allocation11]  }
 0x2d0   :  { %v340_v2 = vsub.f32 1.0, %v339_v0  ;;  %vm360_vm15 = vmor %vm358_vm13, %vm359_vm11  ;;  %s578_s25 = sshll.u32 %s976_s6, 4  ;;  %s579_s25 = int_to_ptr.vmem [resolvable:$true] %s578_s25 }
 0x2d1   :  { %v355_v3 = vsub.f32 1.0, %v354_v1 }
 0x2d2   :  { %v341_v6 = vmul.f32 %v809_v62, %v340_v2 }
 0x2d3   :  { %v356_v8 = vmul.f32 %v811_v63, %v355_v3  ;;  %v791_v3 = vld [vmem:[%s1088_s8] ss:$0 sm:$0xff] }
 0x2d4   :  { %v342_v10 = vadd.f32 %v809_v62, %v341_v6 }
 0x2d5   :  { %v357_v11 = vadd.f32 %v811_v63, %v356_v8 }
 0x2d6   :  { %v346_v14 = vsel %vm345_vm14, %v809_v62, %v342_v10 }
 0x2d7   :  { %v361_v15 = vsel %vm360_vm15, %v811_v63, %v357_v11  ;;  %v351_v16 = vsel %vm348_vm0, %v350_v12, %v346_v14 }
 0x2d8   :  { %v366_v17 = vsel %vm363_vm1, %v365_v13, %v361_v15  ;;  %v352_v18 = vmul.f32 %v805_v48, %v351_v16  ;;  %v769_v48 = vld [vmem:[#allocation9 + $0x10] sm:$0xff] }
 0x2d9   :  { %v367_v19 = vmul.f32 %v807_v49, %v366_v17  ;;  %564 = vmatpush.bf16.msra.mxu3 %v769_v48 }
 0x2da   :  { %371 = vperm.xlu0 %788, %v352_v18  }
 0x2db   :  { %374 = vperm.xlu1 %786, %v367_v19  }
 0x2dd   :  { %565 = vmatpush.bf16.msra.mxu3 %v768_v59 }
 0x2e1   :  { %566 = vmatpush.bf16.msra.mxu3 %v767_v60 }
 0x34c   :  { %v372_v31 = vpop.permute.xlu0 %371 }
 0x34d   :  { %v375_v33 = vpop.permute.xlu1 %374  ;;  %v376_v34 = vperm.slane %v372_v31, %v1053_v32  ;;  %v385_v35 = vmul.f32 %v381_v28, %v372_v31 }
 0x34e   :  { %v377_v37 = vperm.slane %v375_v33, %v1053_v32  ;;  %v386_v38 = vmul.f32 %v382_v30, %v375_v33 }
 0x34f   :  { %v387_v39 = vrot.slane %v385_v35, 4 }
 0x350   :  { %v393_v40 = vrot.slane %v386_v38, 4  ;;  %v378_v41 = vsel %vm300_vm8, %v377_v37, %v376_v34 }
 0x351   :  { %v388_v42 = vadd.f32 %v387_v39, %v385_v35  ;;  %380 = vst.msk [vmem:[#allocation12] sm:$0x3] %vm303_vm9, %v378_v41 }
 0x352   :  { %v394_v44 = vadd.f32 %v393_v40, %v386_v38  ;;  %594 = dma.vmem_to_hbm [thread:$0]  %s590_s19, 32, %s592_s22, [#allocation13]  }
 0x353   :  { %v389_v45 = vrot.slane %v388_v42, 2 }
 0x354   :  { %v395_v46 = vrot.slane %v394_v44, 2 }
 0x355   :  { %v390_v47 = vadd.f32 %v389_v45, %v388_v42 }
 0x356   :  { %v396_v49 = vadd.f32 %v395_v46, %v394_v44 }
 0x357   :  { %v391_v50 = vrot.slane %v390_v47, 1 }
 0x358   :  { %v397_v51 = vrot.slane %v396_v49, 1 }
 0x359   :  { %v392_v32 = vadd.f32 %v391_v50, %v390_v47 }
 0x35a   :  { %v398_v52 = vadd.f32 %v397_v51, %v396_v49 }
 0x35b   :  { %v399_v53 = vpack.c.bf16 %v392_v32, %v392_v32 }
 0x35c   :  { %v400_v54 = vpack.c.bf16 %v398_v52, %v398_v52 }
 0x35d   :  { %v423_v55 = vunpack.c.l.b16 %v399_v53 }
 0x35e   :  { %v424_v56 = vunpack.c.l.b16 %v400_v54 }
 0x360   :  { %v425_v57 = vsel %vm300_vm8, %v424_v56, %v423_v55 }
 0x361   :  { %v426_v58 = vpack.c.b16 %v425_v57, %v425_v57 }
 0x363   :  { %484 = vmatmul.bf16.vlgmr.msra.gmra.mxu2 %v426_v58 }
 0x3e6   :  { %v485_v62 = vpop.f32.mrf.mxu2 }
 0x3e7   :  { %v486_v63 = vadd.f32 %v790_v61, %v485_v62 }
 0x3e9   :  { %v489_v0 = vmax.f32 %v486_v63, 0.0 }
 0x3eb   :  { %v490_v1 = vpack.c.bf16 %v489_v0, %v489_v0 }
 0x3ed   :  { %567 = vmatmul.bf16.vlgmr.msra.gmra.mxu3 %v490_v1 }
 0x3ee   :  { %v487_v2 = vpop.f32.mrf.mxu2 }
 0x470   :  { %v568_v4 = vpop.f32.mrf.mxu3 }
 0x471   :  { %v569_v5 = vadd.f32 %v791_v3, %v568_v4 }
 0x473   :  { %572 = vst [vmem:[#allocation11] sm:$0x3] %v569_v5 }
 0x474   :  { %583 = dma.vmem_to_hbm [thread:$0]  %s579_s25, 32, %s581_s27, [#allocation5]  }
 0x478   :  { %v570_v6 = vpop.f32.mrf.mxu3 }
 0x479   :  { %962 = dma.done.wait [#allocation5], 32  }
 0x47a   :  { %963 = vsyncadd [#allocation5], 4294967264 }
 0x47b   :  { %964 = dma.done.wait [#allocation13], 32  }
 0x47c   :  { %965 = vsyncadd [#allocation13], 4294967264 }
 0x47d   :  { %603 = vsyncpa [#allocation4], 1 }
 0x47e   :  { %604 = vsyncpa [#allocation7], 1 }
 0x47f   :  { %605 = vsyncpa [#allocation10], 1 }
 0x480   :  { %606 = vsyncpa [#allocation5], 1 }
 0x481   :  { %607 = vsyncpa [#allocation13], 1 }

</bundles_post_ra>
